<compile_context>
chip_gen: v5e
topology: v5e:2x2
jax: 0.10.0
libtpu: 0.0.40
codegen_flags: <defaults>
</compile_context>

<pallas_src>
import functools
import numpy as np
import jax
import jax.numpy as jnp
from jax.experimental import pallas as pl
from jax.experimental.pallas import tpu as pltpu

GROUPS = 32
BASE_WIDTH = 8
BN_EPS = 1e-5
LANE = 128
_VMEM_LIMIT = 48 * 1024 * 1024  # <= v7x's 64 MiB physical VMEM; safe on v5e/v6e as well


def _round_up(x, m):
    return (x + m - 1) // m * m


def _cparams(sem):
    return pltpu.CompilerParams(dimension_semantics=sem, vmem_limit_bytes=_VMEM_LIMIT)


# --------------------------------------------------------------------------------------
# Kernel 1: single-shot-K GEMM + bias + (residual) + ReLU   (1x1 convs, conv1 via patches)
# --------------------------------------------------------------------------------------

def _gemm_kernel(*refs, relu, has_res):
    if has_res:
        a_ref, w_ref, b_ref, r_ref, o_ref = refs
    else:
        a_ref, w_ref, b_ref, o_ref = refs
        r_ref = None
    y = jnp.dot(a_ref[...], w_ref[...], preferred_element_type=jnp.float32) + b_ref[...]
    if r_ref is not None:
        y = y + r_ref[...].astype(jnp.float32)
    if relu:
        y = jnp.maximum(y, 0.0)
    o_ref[...] = y.astype(o_ref.dtype)


_GEMM_CACHE = {}


def gemm_bias_act(a, w, bias, *, relu, residual=None, out_dtype=jnp.bfloat16):
    """out = act(a @ w + bias [+ residual]).  a:(M,K)bf16 w:(K,N)bf16 bias:(1,N)f32 res:(M,N)."""
    M, K = a.shape
    N = w.shape[1]
    TM = min(256, _round_up(M, 8))
    Mp = _round_up(M, TM)
    # Single-shot K (every weight in this net is <= 8 MiB bf16).  TN keeps the weight tile
    # <= 4 MiB and leaves >= 2 blocks on a parallel axis for megacore (v7x).
    TN = N if N <= 256 else min(N // 2, 1024)
    if Mp != M:
        a = jnp.pad(a, ((0, Mp - M), (0, 0)))
        if residual is not None:
            residual = jnp.pad(residual, ((0, Mp - M), (0, 0)))
    has_res = residual is not None
    key = (Mp, K, N, TM, TN, bool(relu), has_res, jnp.dtype(out_dtype).name)
    if key not in _GEMM_CACHE:
        kern = functools.partial(_gemm_kernel, relu=bool(relu), has_res=has_res)
        in_specs = [
            pl.BlockSpec((TM, K), lambda i, j: (i, 0)),
            pl.BlockSpec((K, TN), lambda i, j: (0, j)),
            pl.BlockSpec((1, TN), lambda i, j: (0, j)),
        ]
        if has_res:
            in_specs.append(pl.BlockSpec((TM, TN), lambda i, j: (i, j)))
        _GEMM_CACHE[key] = pl.pallas_call(
            kern,
            out_shape=jax.ShapeDtypeStruct((Mp, N), out_dtype),
            grid=(Mp // TM, N // TN),
            in_specs=in_specs,
            out_specs=pl.BlockSpec((TM, TN), lambda i, j: (i, j)),
            compiler_params=_cparams(("parallel", "parallel")),
        )
    args = (a, w, bias) + ((residual,) if has_res else ())
    out = _GEMM_CACHE[key](*args)
    return out if Mp == M else out[:M]


# --------------------------------------------------------------------------------------
# Grouped 3x3 conv helpers (shared by the standalone gconv kernel and the fused bottleneck)
# --------------------------------------------------------------------------------------

def _shift_rows(x, s):
    """A[m] = x[m + s], zero where m + s falls outside [0, rows).  Static s."""
    if s == 0:
        return x
    rows, cols = x.shape
    if abs(s) >= rows:
        return jnp.zeros_like(x)
    z = jnp.zeros((abs(s), cols), x.dtype)
    if s > 0:
        return jnp.concatenate([x[s:], z], axis=0)
    return jnp.concatenate([z, x[:s]], axis=0)


def _gconv_chunks(x, w_ref, b_ref, H, W, NC):
    """ReLU(grouped 3x3 'same' conv + bias) on a flattened (H*W, NC*128) activation.
    Weights are block-diagonal lane-dense (9, NC, 128, 128) tiles (BN scale pre-folded).
    Returns NC chunks of shape (H*W, 128) in bf16.  W must be a power of two."""
    HW = H * W
    C = NC * LANE
    idx = jax.lax.broadcasted_iota(jnp.int32, (HW, C), 0)
    ww = jnp.bitwise_and(idx, W - 1)          # column index (W is a power of two)
    # Build the 9 shifted + edge-masked tap activations once (hoisted out of the chunk loop).
    taps = []
    for di in (-1, 0, 1):
        for dj in (-1, 0, 1):
            a = _shift_rows(x, di * W + dj)
            conds = []
            if di == -1:
                conds.append(idx >= W)                 # h >= 1
            if di == 1:
                conds.append(idx < (H - 1) * W)        # h <= H-2
            if dj == -1:
                conds.append(ww >= 1)
            if dj == 1:
                conds.append(ww <= W - 2)
            if conds:
                valid = conds[0]
                for cnd in conds[1:]:
                    valid = jnp.logical_and(valid, cnd)
                a = jnp.where(valid, a, jnp.zeros_like(a))
            taps.append(a)
    chunks = []
    for c in range(NC):
        lo = c * LANE
        acc = jnp.zeros((HW, LANE), jnp.float32)
        for t in range(9):
            acc = acc + jnp.dot(taps[t][:, lo:lo + LANE], w_ref[t, c],
                                preferred_element_type=jnp.float32)
        y = jnp.maximum(acc + b_ref[0:1, lo:lo + LANE], 0.0)
        chunks.append(y.astype(jnp.bfloat16))
    return chunks


# --------------------------------------------------------------------------------------
# Kernel 2: standalone grouped 3x3 stride-1 conv + bias + ReLU  (grid = (N,))
# --------------------------------------------------------------------------------------

def _gconv3x3_kernel(x_ref, w_ref, b_ref, o_ref, *, H, W, NC):
    chunks = _gconv_chunks(x_ref[0], w_ref, b_ref, H, W, NC)
    for c in range(NC):
        o_ref[0, :, c * LANE:(c + 1) * LANE] = chunks[c]


_GCONV_CACHE = {}


def gconv3x3_s1(x, w_packed, bias):
    """Grouped 3x3 stride-1 'same' conv + BN-bias + ReLU (scale folded into w_packed)."""
    N, H, W, C = x.shape
    assert (W & (W - 1)) == 0, "W must be a power of two"
    NC = C // LANE
    xf = x.reshape(N, H * W, C)                               # free reshape
    key = (N, H, W, C)
    if key not in _GCONV_CACHE:
        kern = functools.partial(_gconv3x3_kernel, H=H, W=W, NC=NC)
        _GCONV_CACHE[key] = pl.pallas_call(
            kern,
            out_shape=jax.ShapeDtypeStruct((N, H * W, C), x.dtype),
            grid=(N,),
            in_specs=[
                pl.BlockSpec((1, H * W, C), lambda n: (n, 0, 0)),
                pl.BlockSpec((9, NC, LANE, LANE), lambda n: (0, 0, 0, 0)),
                pl.BlockSpec((1, C), lambda n: (0, 0)),
            ],
            out_specs=pl.BlockSpec((1, H * W, C), lambda n: (n, 0, 0)),
            compiler_params=_cparams(("parallel",)),
        )
    return _GCONV_CACHE[key](xf, w_packed, bias).reshape(N, H, W, C)


# --------------------------------------------------------------------------------------
# Kernel 3: fused stride-1 bottleneck (1x1 -> grouped 3x3 -> 1x1 + residual + ReLU)
# --------------------------------------------------------------------------------------

def _bottleneck_kernel(x_ref, w1_ref, b1_ref, w2_ref, b2_ref, w3_ref, b3_ref, o_ref,
                       *, H, W, NC):
    x = x_ref[0]                                              # (HW, C) bf16
    h = jnp.dot(x, w1_ref[...], preferred_element_type=jnp.float32) + b1_ref[...]
    h = jnp.maximum(h, 0.0).astype(jnp.bfloat16)              # (HW, width)
    g = jnp.concatenate(_gconv_chunks(h, w2_ref, b2_ref, H, W, NC), axis=1)
    y = jnp.dot(g, w3_ref[...], preferred_element_type=jnp.float32) + b3_ref[...]
    y = jnp.maximum(y + x.astype(jnp.float32), 0.0)
    o_ref[0] = y.astype(o_ref.dtype)


_BLOCK_CACHE = {}


def bottleneck_fused(x, blk):
    N, H, W, C = x.shape
    assert (W & (W - 1)) == 0
    width = blk["conv1_w"].shape[1]
    NC = width // LANE
    xf = x.reshape(N, H * W, C)
    key = (N, H, W, C, width)
    if key not in _BLOCK_CACHE:
        kern = functools.partial(_bottleneck_kernel, H=H, W=W, NC=NC)
        _BLOCK_CACHE[key] = pl.pallas_call(
            kern,
            out_shape=jax.ShapeDtypeStruct((N, H * W, C), x.dtype),
            grid=(N,),
            in_specs=[
                pl.BlockSpec((1, H * W, C), lambda n: (n, 0, 0)),
                pl.BlockSpec((C, width), lambda n: (0, 0)),
                pl.BlockSpec((1, width), lambda n: (0, 0)),
                pl.BlockSpec((9, NC, LANE, LANE), lambda n: (0, 0, 0, 0)),
                pl.BlockSpec((1, width), lambda n: (0, 0)),
                pl.BlockSpec((width, C), lambda n: (0, 0)),
                pl.BlockSpec((1, C), lambda n: (0, 0)),
            ],
            out_specs=pl.BlockSpec((1, H * W, C), lambda n: (n, 0, 0)),
            compiler_params=_cparams(("parallel",)),
        )
    out = _BLOCK_CACHE[key](xf, blk["conv1_w"], blk["conv1_b"], blk["conv2_w"],
                            blk["conv2_b"], blk["conv3_w"], blk["conv3_b"])
    return out.reshape(N, H, W, C)


# --------------------------------------------------------------------------------------
# Kernel 4: 3x3 / stride-2 / pad-1 max pool (no pad, no full-res intermediate, grid=(N,))
#   Even/odd columns are pre-split by a free reshape (W,C) -> (W/2, 2C).
#   Zero padding == -inf padding because the input follows a ReLU (>= 0).
# --------------------------------------------------------------------------------------

def _maxpool_kernel(x_ref, o_ref, *, H, Wo, C):
    Ho = H // 2
    for yo in range(Ho):
        r0 = x_ref[0, max(2 * yo - 1, 0)]                     # (Wo, 2C); top row clamp is
        r1 = x_ref[0, 2 * yo]                                 # harmless for a max
        r2 = x_ref[0, 2 * yo + 1]
        m = jnp.maximum(jnp.maximum(r0, r1), r2)
        ev = m[:, :C]                                         # column 2*w'
        od = m[:, C:]                                         # column 2*w' + 1
        od_prev = jnp.concatenate([jnp.zeros((1, C), m.dtype), od[:-1]], axis=0)  # col 2*w'-1
        o_ref[0, yo] = jnp.maximum(jnp.maximum(ev, od), od_prev)


_MP_CACHE = {}


def maxpool_3x3_s2(x):
    N, H, W, C = x.shape
    assert H % 2 == 0 and W % 2 == 0
    Ho, Wo = H // 2, W // 2
    xr = x.reshape(N, H, Wo, 2 * C)                           # free reshape
    key = (N, H, W, C)
    if key not in _MP_CACHE:
        kern = functools.partial(_maxpool_kernel, H=H, Wo=Wo, C=C)
        _MP_CACHE[key] = pl.pallas_call(
            kern,
            out_shape=jax.ShapeDtypeStruct((N, Ho, Wo, C), x.dtype),
            grid=(N,),
            in_specs=[pl.BlockSpec((1, H, Wo, 2 * C), lambda n: (n, 0, 0, 0))],
            out_specs=pl.BlockSpec((1, Ho, Wo, C), lambda n: (n, 0, 0, 0)),
            compiler_params=_cparams(("parallel",)),
        )
    return _MP_CACHE[key](xr)


# --------------------------------------------------------------------------------------
# Kernel 5: fused tail -- global average pool + fc1 (2048->1000 pad 1024) + fc2 (->1 pad 128)
# --------------------------------------------------------------------------------------

def _tail_kernel(x_ref, w1_ref, b1_ref, w2_ref, b2_ref, o_ref):
    feat = jnp.mean(x_ref[...].astype(jnp.float32), axis=1)                  # (N, C)
    h = jnp.dot(feat.astype(jnp.bfloat16), w1_ref[...],
                preferred_element_type=jnp.float32) + b1_ref[...]
    y = jnp.dot(h.astype(jnp.bfloat16), w2_ref[...],
                preferred_element_type=jnp.float32) + b2_ref[...]
    o_ref[...] = y


_TAIL_CACHE = {}


def tail_head(x, w1, b1, w2, b2):
    N, H, W, C = x.shape
    xr = x.reshape(N, H * W, C)
    key = (N, H * W, C)
    if key not in _TAIL_CACHE:
        _TAIL_CACHE[key] = pl.pallas_call(
            _tail_kernel,
            out_shape=jax.ShapeDtypeStruct((N, w2.shape[1]), jnp.float32),
            grid=(1,),
            in_specs=[
                pl.BlockSpec((N, H * W, C), lambda i: (0, 0, 0)),
                pl.BlockSpec(w1.shape, lambda i: (0, 0)),
                pl.BlockSpec(b1.shape, lambda i: (0, 0)),
                pl.BlockSpec(w2.shape, lambda i: (0, 0)),
                pl.BlockSpec(b2.shape, lambda i: (0, 0)),
            ],
            out_specs=pl.BlockSpec((N, w2.shape[1]), lambda i: (0, 0)),
            compiler_params=_cparams(("arbitrary",)),
        )
    return _TAIL_CACHE[key](xr, w1, b1, w2, b2)


# --------------------------------------------------------------------------------------
# im2col (only used for conv1: 7x7 on an 8-channel input -> small patch tensor)
# --------------------------------------------------------------------------------------

def _extract_patches(x, kh, kw, stride, padding):
    N, H, W, C = x.shape
    xp = jnp.pad(x, ((0, 0), (padding, padding), (padding, padding), (0, 0)))
    Ho = (H + 2 * padding - kh) // stride + 1
    Wo = (W + 2 * padding - kw) // stride + 1
    cols = [xp[:, ki:ki + stride * Ho:stride, kj:kj + stride * Wo:stride, :]
            for ki in range(kh) for kj in range(kw)]
    p = jnp.stack(cols, axis=3)              # (N, Ho, Wo, kh*kw, C)
    return p.reshape(N * Ho * Wo, kh * kw * C), Ho, Wo


# --------------------------------------------------------------------------------------
# Deterministic parameter construction + packing (BN scale folded, bf16, lane-dense)
# --------------------------------------------------------------------------------------

class ParamGen:
    def __init__(self, key):
        self.key = key
        self.count = 0

    def _next(self):
        self.count += 1
        return jax.random.fold_in(self.key, self.count)

    def conv(self, cout, cin_g, kh, kw):
        fan_in = cin_g * kh * kw
        return jax.random.normal(self._next(), (cout, cin_g, kh, kw), jnp.float32) * (1.0 / np.sqrt(fan_in))

    def bn(self, c):
        gamma = jnp.ones((c,), jnp.float32)
        beta = 0.01 * jax.random.normal(self._next(), (c,), jnp.float32)
        mean = jnp.zeros((c,), jnp.float32)
        var = jnp.ones((c,), jnp.float32)
        scale = gamma / jnp.sqrt(var + BN_EPS)
        bias = beta - mean * scale
        return scale, bias

    def linear(self, cout, cin):
        bound = 1.0 / np.sqrt(cin)
        w = jax.random.uniform(self._next(), (cout, cin), jnp.float32, -bound, bound)
        b = jax.random.uniform(self._next(), (cout,), jnp.float32, -bound, bound)
        return w, b


def pack_1x1(w, scale, cin_pad=None):
    # w: (Cout, Cin, 1, 1) -> fold BN scale -> (Cin[, padded], Cout) bf16
    wf = (w * scale[:, None, None, None])[:, :, 0, 0]
    wt = jnp.asarray(wf.T, jnp.float32)
    if cin_pad is not None and cin_pad > wt.shape[0]:
        wt = jnp.pad(wt, ((0, cin_pad - wt.shape[0]), (0, 0)))
    return wt.astype(jnp.bfloat16)


def pack_conv1(w, scale, bias):
    # w: (64, 6, 7, 7) -> pad Cin 6->8, fold BN scale -> (392, 64) -> pad Cout 64->128
    wf = np.asarray(w * scale[:, None, None, None])
    wf = np.pad(wf, ((0, 0), (0, 8 - wf.shape[1]), (0, 0), (0, 0)))
    wf = np.transpose(wf, (2, 3, 1, 0)).reshape(-1, wf.shape[0])     # (392, 64)
    wf = np.pad(wf, ((0, 0), (0, LANE - wf.shape[1])))               # (392, 128)
    b = np.zeros((1, LANE), np.float32)
    b[0, :64] = np.asarray(bias)
    return jnp.asarray(wf, jnp.bfloat16), jnp.asarray(b)


def pack_grouped3x3(w, scale):
    # w: (C, Cg, 3, 3) grouped (G=32) -> block-diagonal lane-dense tiles (9, C//128, 128, 128)
    wf = np.asarray(w * scale[:, None, None, None])
    C, Cg = wf.shape[0], wf.shape[1]
    NC = C // LANE
    GP = LANE // Cg                           # whole groups packed per 128-lane chunk
    packed = np.zeros((9, NC, LANE, LANE), np.float32)
    for g in range(C // Cg):
        c, gp = divmod(g, GP)
        wg = wf[g * Cg:(g + 1) * Cg]                             # (Ng, Cg, 3, 3)
        wg = np.transpose(wg, (2, 3, 1, 0)).reshape(9, Cg, Cg)   # (tap, cin_local, cout_local)
        sl = slice(gp * Cg, (gp + 1) * Cg)
        packed[:, c, sl, sl] = wg
    return jnp.asarray(packed, jnp.bfloat16)


def build_params(key):
    pg = ParamGen(key)
    P = {}
    w = pg.conv(64, 6, 7, 7)
    s, b = pg.bn(64)
    P["conv1_w"], P["conv1_b"] = pack_conv1(w, s, b)          # 128-wide (zero-padded) stem
    inplanes = 64
    layers = []
    for planes, blocks, stride in [(64, 3, 1), (128, 4, 2), (256, 23, 2), (512, 3, 2)]:
        width = int(planes * (BASE_WIDTH / 64.0)) * GROUPS
        out_ch = planes * 4
        layer = []
        for i in range(blocks):
            s_ = stride if i == 0 else 1
            cin_pad = LANE if inplanes == 64 else None        # stem carries 128 channels
            w1 = pg.conv(width, inplanes, 1, 1); sc1, b1 = pg.bn(width)
            w2 = pg.conv(width, width // GROUPS, 3, 3); sc2, b2 = pg.bn(width)
            w3 = pg.conv(out_ch, width, 1, 1); sc3, b3 = pg.bn(out_ch)
            blk = {
                "stride": s_,
                "conv1_w": pack_1x1(w1, sc1, cin_pad), "conv1_b": b1.reshape(1, -1),
                "conv2_w": pack_grouped3x3(w2, sc2), "conv2_b": b2.reshape(1, -1),
                "conv3_w": pack_1x1(w3, sc3), "conv3_b": b3.reshape(1, -1),
            }
            if i == 0 and (s_ != 1 or inplanes != out_ch):
                wd = pg.conv(out_ch, inplanes, 1, 1); scd, bd = pg.bn(out_ch)
                blk["ds_w"] = pack_1x1(wd, scd, cin_pad)
                blk["ds_b"] = bd.reshape(1, -1)
            layer.append(blk)
            inplanes = out_ch
        layers.append(layer)
    P["layers"] = layers
    # fc: Linear(2048,1000) -> Linear(1000,1); padded to lane-friendly 1024 / 128 (zero pads)
    fw1, fb1 = pg.linear(1000, 2048)
    fw2, fb2 = pg.linear(1, 1000)
    W1 = jnp.zeros((2048, 1024), jnp.float32).at[:, :1000].set(fw1.T)
    B1 = jnp.zeros((1, 1024), jnp.float32).at[0, :1000].set(fb1)
    W2 = jnp.zeros((1024, 128), jnp.float32).at[:1000, 0].set(fw2[0])
    B2 = jnp.zeros((1, 128), jnp.float32).at[0, 0].set(fb2[0])
    P["fc1_w"], P["fc1_b"] = W1.astype(jnp.bfloat16), B1
    P["fc2_w"], P["fc2_b"] = W2.astype(jnp.bfloat16), B2
    return P


# --------------------------------------------------------------------------------------
# Forward pass
# --------------------------------------------------------------------------------------

def bottleneck_unfused(x, blk):
    """Used for downsample / stride-2 blocks and for layer4 (full-N weight pair would be
    too large to keep VMEM-resident double-buffered on v7x)."""
    N, H, W, Cin = x.shape
    stride = blk["stride"]
    width = blk["conv1_w"].shape[1]
    Cout = blk["conv3_w"].shape[1]
    if "ds_w" in blk:
        xs = x[:, ::stride, ::stride, :] if stride > 1 else x
        Ho, Wo = xs.shape[1], xs.shape[2]
        identity = gemm_bias_act(xs.reshape(-1, Cin), blk["ds_w"], blk["ds_b"], relu=False)
    else:
        Ho, Wo = H, W
        identity = x.reshape(-1, Cin)
    out = gemm_bias_act(x.reshape(-1, Cin), blk["conv1_w"], blk["conv1_b"], relu=True)
    out = out.reshape(N, H, W, width)
    # 3x3 grouped conv; the 3 stride-2 variants run at stride 1 and are subsampled (accepted
    # tradeoff: only 3 small convs in the whole net).
    out = gconv3x3_s1(out, blk["conv2_w"], blk["conv2_b"])
    if stride > 1:
        out = out[:, ::stride, ::stride, :]
    out = gemm_bias_act(out.reshape(-1, width), blk["conv3_w"], blk["conv3_b"],
                        relu=True, residual=identity)
    return out.reshape(N, Ho, Wo, Cout)


def bottleneck_forward(x, blk):
    # Fuse stride-1, no-downsample blocks of layers 1-3 into one pallas_call.
    if blk["stride"] == 1 and "ds_w" not in blk and blk["conv1_w"].shape[1] <= 1024:
        return bottleneck_fused(x, blk)
    return bottleneck_unfused(x, blk)


def resnext101_forward(x_nchw, P):
    x = jnp.transpose(x_nchw.astype(jnp.float32), (0, 2, 3, 1))      # NCHW -> NHWC
    x = jnp.pad(x, ((0, 0), (0, 0), (0, 0), (0, 2)))                 # 6 -> 8 input channels
    x = x.astype(jnp.bfloat16)
    N = x.shape[0]
    patches, Ho, Wo = _extract_patches(x, 7, 7, 2, 3)                 # im2col for the stem only
    x = gemm_bias_act(patches, P["conv1_w"], P["conv1_b"], relu=True)
    x = x.reshape(N, Ho, Wo, LANE)                                    # 128 channels (64 + zeros)
    x = maxpool_3x3_s2(x)
    for layer in P["layers"]:
        for blk in layer:
            x = bottleneck_forward(x, blk)
    y = tail_head(x, P["fc1_w"], P["fc1_b"], P["fc2_w"], P["fc2_b"])  # avgpool + fc1 + fc2
    return y[:, :1]                                                   # (N, 1)


# --------------------------------------------------------------------------------------

if __name__ == "__main__":
    key = jax.random.PRNGKey(0)
    params = build_params(key)
    x = jax.random.normal(jax.random.fold_in(key, 12345), (2, 6, 64, 64), jnp.float32)  # NCHW, 6-ch
    out = resnext101_forward(x, params)
    out = jax.block_until_ready(out)
    assert out.shape == (2, 1), out.shape
    assert bool(jnp.all(jnp.isfinite(out)))
    print("KERNEL_OK")
</pallas_src>

<mosaic_0001>
module attributes {stable_mosaic.version = 11 : i64} {
  func.func @_gemm_kernel(%arg0: i32, %arg1: i32, %arg2: memref<256x392xbf16, #tpu.memory_space<vmem>>, %arg3: memref<392x128xbf16, #tpu.memory_space<vmem>>, %arg4: memref<1x128xf32, #tpu.memory_space<vmem>>, %arg5: memref<256x128xbf16, #tpu.memory_space<vmem>>) attributes {dimension_semantics = [#tpu.dimension_semantics<parallel>, #tpu.dimension_semantics<parallel>], iteration_bounds = array<i64: 8, 1>, scalar_prefetch = 0 : i64, scratch_operands = 0 : i64, tpu.core_type = #tpu.core_type<tc>, window_params = [{transform_indices = @transform_0, window_bounds = array<i64: 256, 392>}, {transform_indices = @transform_1, window_bounds = array<i64: 392, 128>}, {transform_indices = @transform_2, window_bounds = array<i64: 1, 128>}, {transform_indices = @transform_3, window_bounds = array<i64: 256, 128>}]} {
    %c0 = arith.constant 0 : index
    %c0_0 = arith.constant 0 : index
    %0 = vector.load %arg2[%c0, %c0_0] : memref<256x392xbf16, #tpu.memory_space<vmem>>, vector<256x392xbf16>
    %c0_1 = arith.constant 0 : index
    %c0_2 = arith.constant 0 : index
    %1 = vector.load %arg3[%c0_1, %c0_2] : memref<392x128xbf16, #tpu.memory_space<vmem>>, vector<392x128xbf16>
    %cst = arith.constant dense<0.000000e+00> : vector<256x128xf32>
    %2 = tpu.matmul %0, %1, %cst {dimension_numbers = #tpu.dot_dimension_numbers<[1], [0], [0], [1], [0, 0, 1, 1], [], []>} : vector<256x392xbf16>, vector<392x128xbf16>, vector<256x128xf32> -> vector<256x128xf32>
    %c0_3 = arith.constant 0 : index
    %c0_4 = arith.constant 0 : index
    %3 = vector.load %arg4[%c0_3, %c0_4] : memref<1x128xf32, #tpu.memory_space<vmem>>, vector<1x128xf32>
    %4 = vector.broadcast %3 : vector<1x128xf32> to vector<256x128xf32>
    %5 = arith.addf %2, %4 : vector<256x128xf32>
    %cst_5 = arith.constant 0.000000e+00 : f32
    %6 = vector.broadcast %cst_5 : f32 to vector<256x128xf32>
    %7 = arith.maximumf %5, %6 : vector<256x128xf32>
    %8 = arith.truncf %7 : vector<256x128xf32> to vector<256x128xbf16>
    %c0_6 = arith.constant 0 : index
    %c0_7 = arith.constant 0 : index
    %9 = vector.load %arg5[%c0_6, %c0_7] : memref<256x128xbf16, #tpu.memory_space<vmem>>, vector<256x128xbf16>
    tpu.vector_store %arg5[%c0_6, %c0_7], %8 {strides = array<i32>} : memref<256x128xbf16, #tpu.memory_space<vmem>>, vector<256x128xbf16>,
    return
  }
  func.func @transform_0(%arg0: i32, %arg1: i32) -> (i32, i32) {
    %c0_i32 = arith.constant 0 : i32
    %c0_i32_0 = arith.constant 0 : i32
    return %arg0, %c0_i32 : i32, i32
  }
  func.func @transform_1(%arg0: i32, %arg1: i32) -> (i32, i32) {
    %c0_i32 = arith.constant 0 : i32
    %c0_i32_0 = arith.constant 0 : i32
    return %c0_i32, %arg1 : i32, i32
  }
  func.func @transform_2(%arg0: i32, %arg1: i32) -> (i32, i32) {
    %c0_i32 = arith.constant 0 : i32
    %c0_i32_0 = arith.constant 0 : i32
    return %c0_i32, %arg1 : i32, i32
  }
  func.func @transform_3(%arg0: i32, %arg1: i32) -> (i32, i32) {
    %c0_i32 = arith.constant 0 : i32
    return %arg0, %arg1 : i32, i32
  }
}

</mosaic_0001>

<bundles_post_ra>
// kernel: tpu_custom_call.1
= control target key start
LH: loop header
LB: loop body
LE: loop exit
PB: predicated region body
PF: predicated region fallthrough
CT: control target
= control target key end

     0   :  { %8 = vsyncpa [#allocation3], 0  ;;  %s2516_s0 = inlined_call_operand.vmem [shape: bf16[2048,392], index: 0, kind: input, shape index: {}]   ;;  %s2517_s1 = inlined_call_operand.vmem [shape: bf16[392,128], index: 1, kind: input, shape index: {}]   ;;  %s2518_s2 = inlined_call_operand.vmem [shape: f32[1,128], index: 2, kind: input, shape index: {}]   ;;  %s2519_s3 = inlined_call_operand.hbm [shape: bf16[2048,128], index: 3, kind: output, shape index: {}]  }
   0x1   :  { %10 = vsyncpa [#allocation3 + $0x1], 0  ;;  %s2139_s12 = smov 0   ;;  %s2141_s13 = smov 0  }
   0x2   :  { %s2143_s14 = smov 0   ;;  %s2145_s15 = smov 0  }
   0x3   :  { %s2147_s16 = smov 0   ;;  %s2149_s17 = smov 0  }
   0x4 LB: > { %s1410_s18 = sadd.s32 4294967295, %s2115_s17   ;;  %s1411_s19 = sadd.s32 4294967294, %s2115_s17   ;;  %s2115_s17 = sphi %s2149_s17, %s16_s17   ;;  %s2111_s16 = sphi %s2147_s16, %s2526_s16   ;;  %s2107_s15 = sphi %s2145_s15, %s2525_s15   ;;  %s2103_s14 = sphi %s2143_s14, %s2524_s14   ;;  %s2099_s13 = sphi %s2141_s13, %s2523_s13   ;;  %s2095_s12 = sphi %s2139_s12, %s2522_s12  }
   0x5   : > { %s28_s20 = sadd.s32 1, %s2111_s16  ;;  %s115_s21 = sadd.s32 1, %s2103_s14 }
   0x6   : > { %p30_p0 = scmp.ge.s32.totalorder %s28_s20, 8  ;;  %p125_p1 = scmp.ne.s32.totalorder %s2103_s14, %s2099_s13 }
   0x7   : > { %p126_p2 = scmp.eq.s32.totalorder %s1410_s18, 7  ;;  %p131_p3 = scmp.ne.s32.totalorder %s2099_s13, %s2095_s12 }
   0x8   : > { %s2528_s20 = smov (%p30_p0, %s28_s20), 0  ;;  %p132_p5 = scmp.eq.s32.totalorder %s1411_s19, 7 }
   0x9   : > { %p2179_p4 = por %p126_p2, %p125_p1  ;;  %s110_s23 = ssub.s32 %s2111_s16, %s2528_s20 }
   0xa   : > { %p1416_p6 = scmp.ge.s32.totalorder %s2115_s17, 1  ;;  %p113_p7 = scmp.eq.s32.totalorder %s110_s23, 0 }
   0xb   : > { %p2186_p8 = por %p132_p5, %p131_p3  ;;  %p173_p9 = scmp.lt.s32.totalorder %s2115_s17, 9 }
   0xc   : > { %s2192_s25 = scalar_select %p113_p7, %s2103_s14, %s115_s21  }
   0xd   : > { %p174_p10 = pnand %p1416_p6, %p173_p9 }
   0xe   : > { %s1418_s5 = sshll.u32 (!%p174_p10), %s2107_s15, 5  ;;  %s202_s7 = sand.u32 (!%p174_p10), 1, %s2099_s13  }
   0xf   : > { %177 = sbr.rel (%p174_p10) target bundleno = 446 (0x1be), region = 32  ;;  %p206_p11 = scmp.lt.s32.totalorder (!%p174_p10), %s1418_s5, 255 }
  0x10   : > { %s1417_s8 = sshll.u32 (!%p174_p10), %s202_s7, 7  ;;  %s2057_s29 = scalar_lea.hbm (!%p174_p10), %s2519_s3, 1024 }
  0x11   : > { %s2379_s9 = scalar_lea.vmem (!%p174_p10), [#allocation2], %s1417_s8 }
  0x12   : > { %s1308_s19 = sshll.u32 (!%p174_p10), %s2379_s9, 4  ;;  %s1309_s19 = int_to_ptr.vmem [resolvable:$true] %s1308_s19 }
  0x14   : > { %v1866_v0 = vld [vmem:[%s2517_s1 + $0x38] sm:$0xff]  ;;  %v1865_v3 = vld [vmem:[%s2517_s1 + $0x30] sm:$0xff]  ;;  %s2530_s5 = smov (!%p206_p11, %s1418_s5), 255  ;;  %v1864_v6 = vld [vmem:[%s2517_s1 + $0x28] sm:$0xff]  ;;  %vm838_vm0 = vcmask 1043456   ;;  %vm789_vm1 = vcmask 64512  }
  0x15   : > { %v1874_v1 = vld [vmem:[%s2517_s1 + $0x78] sm:$0xff]  ;;  %842 = vmatpush.bf16.msra.mxu0 %v1866_v0  ;;  %v1873_v4 = vld [vmem:[%s2517_s1 + $0x70] sm:$0xff]  ;;  %s1794_s18 = sshll.u32 %s2530_s5, 4  ;;  %v1872_v7 = vld [vmem:[%s2517_s1 + $0x68] sm:$0xff] }
  0x16   : > { %v1882_v2 = vld [vmem:[%s2517_s1 + $0xb8] sm:$0xff]  ;;  %931 = vmatpush.bf16.msra.mxu1 %v1874_v1  ;;  %v1881_v5 = vld [vmem:[%s2517_s1 + $0xb0] sm:$0xff]  ;;  %v333_v8 = vld [vmem:[%s2517_s1 + $0xc0] sm:$0xf]  ;;  %s2225_s4 = scalar_lea.vmem %s2516_s0, %s1794_s18 }
  0x17   : > { %1020 = vmatpush.bf16.msra.mxu2 %v1882_v2  ;;  %v1880_v9 = vld [vmem:[%s2517_s1 + $0xa8] sm:$0xff]  ;;  %v739_v10 = vunpack.c.l.b16 %v333_v8  ;;  %v1433_v12 = vld [vmem:[%s2225_s4 + $0x18] sm:$0xf0]  ;;  %v1863_v14 = vld [vmem:[%s2517_s1 + $0x20] sm:$0xff] }
  0x18   : > { %v1796_v11 = vld [vmem:[%s2225_s4 + $0xc] sm:$0xf]  ;;  %v1871_v15 = vld [vmem:[%s2517_s1 + $0x60] sm:$0xff]  ;;  %v1862_v19 = vld [vmem:[%s2517_s1 + $0x18] sm:$0xff] }
  0x19   : > { %843 = vmatpush.bf16.msra.mxu0 %v1865_v3  ;;  %v764_v13 = vpack.c.b16 %v739_v10, %v739_v10  ;;  %v1879_v16 = vld [vmem:[%s2517_s1 + $0xa0] sm:$0xff]  ;;  %v1436_v18 = vor.u32 %v1796_v11, %v1433_v12  ;;  %v1870_v20 = vld [vmem:[%s2517_s1 + $0x58] sm:$0xff]  ;;  %v1861_v22 = vld [vmem:[%s2517_s1 + $0x10] sm:$0xff] }
  0x1a   : > { %932 = vmatpush.bf16.msra.mxu1 %v1873_v4  ;;  %v1878_v21 = vld [vmem:[%s2517_s1 + $0x98] sm:$0xff]  ;;  %v1869_v23 = vld [vmem:[%s2517_s1 + $0x50] sm:$0xff]  ;;  %v1860_v25 = vld [vmem:[%s2517_s1 + $0x8] sm:$0xff] }
  0x1b   : > { %1021 = vmatpush.bf16.msra.mxu2 %v1881_v5  ;;  %v840_v17 = vsel %vm838_vm0, %v764_v13, 0  ;;  %v1877_v24 = vld [vmem:[%s2517_s1 + $0x90] sm:$0xff]  ;;  %v1868_v26 = vld [vmem:[%s2517_s1 + $0x48] sm:$0xff]  ;;  %v1449_v29 = vld [vmem:[%s2225_s4 + $0x38] sm:$0xf0] }
  0x1c   : > { %1116 = vmatpush.bf16.msra.mxu3 %v840_v17  ;;  %v1876_v27 = vld [vmem:[%s2517_s1 + $0x88] sm:$0xff]  ;;  %v1859_v30 = vld [vmem:[%s2517_s1] sm:$0xff]  ;;  %v1797_v33 = vld [vmem:[%s2225_s4 + $0xc] sm:$0xf0] }
  0x1d   : > { %844 = vmatpush.bf16.msra.mxu0 %v1864_v6  ;;  %v1800_v28 = vld [vmem:[%s2225_s4 + $0x2c] sm:$0xf]  ;;  %v1867_v31 = vld [vmem:[%s2517_s1 + $0x40] sm:$0xff]  ;;  %v1425_v35 = vld [vmem:[%s2225_s4 + $0x10] sm:$0xf0] }
  0x1e   : > { %933 = vmatpush.bf16.msra.mxu1 %v1872_v7  ;;  %v1423_v32 = vld [vmem:[%s2225_s4] sm:$0xf]  ;;  %v1795_v34 = vld [vmem:[%s2225_s4 + $0x4] sm:$0xf]  ;;  %v1431_v37 = vld [vmem:[%s2225_s4 + $0x8] sm:$0xf]  ;;  %v1452_v39 = vor.u32 %v1800_v28, %v1449_v29 }
  0x1f   : > { %1022 = vmatpush.bf16.msra.mxu2 %v1880_v9  ;;  %1773 = vmatmul.msk.bf16.vlgmr.msra.gmra.mxu3 %vm789_vm1, %v1436_v18  ;;  %v1875_v36 = vld [vmem:[%s2517_s1 + $0x80] sm:$0xff]  ;;  %v1798_v38 = vld [vmem:[%s2225_s4 + $0x14] sm:$0xf0]  ;;  %v1424_v40 = vor.u32 %v1797_v33, %v1423_v32  ;;  %v1428_v41 = vor.u32 %v1795_v34, %v1425_v35  ;;  %v1804_v43 = vld [vmem:[%s2225_s4 + $0x4c] sm:$0xf] }
  0x20   : > { %v1432_v42 = vor.u32 %v1798_v38, %v1431_v37  ;;  %v1465_v44 = vld [vmem:[%s2225_s4 + $0x58] sm:$0xf0]  ;;  %v1439_v45 = vld [vmem:[%s2225_s4 + $0x20] sm:$0xf]  ;;  %v1801_v46 = vld [vmem:[%s2225_s4 + $0x2c] sm:$0xf0] }
  0x21   : > { %845 = vmatpush.bf16.msra.mxu0 %v1863_v14  ;;  %v1799_v47 = vld [vmem:[%s2225_s4 + $0x24] sm:$0xf]  ;;  %v1441_v48 = vld [vmem:[%s2225_s4 + $0x30] sm:$0xf0]  ;;  %v1447_v49 = vld [vmem:[%s2225_s4 + $0x28] sm:$0xf]  ;;  %v1468_v51 = vor.u32 %v1804_v43, %v1465_v44  ;;  %v1440_v52 = vor.u32 %v1801_v46, %v1439_v45 }
  0x22   : > { %934 = vmatpush.bf16.msra.mxu1 %v1871_v15  ;;  %v1802_v50 = vld [vmem:[%s2225_s4 + $0x34] sm:$0xf0]  ;;  %v1444_v53 = vor.u32 %v1799_v47, %v1441_v48  ;;  %v1808_v55 = vld [vmem:[%s2225_s4 + $0x6c] sm:$0xf]  ;;  %v1481_v56 = vld [vmem:[%s2225_s4 + $0x78] sm:$0xf0] }
  0x23   : > { %1023 = vmatpush.bf16.msra.mxu2 %v1879_v16  ;;  %v1448_v54 = vor.u32 %v1802_v50, %v1447_v49  ;;  %v1455_v57 = vld [vmem:[%s2225_s4 + $0x40] sm:$0xf]  ;;  %v1805_v58 = vld [vmem:[%s2225_s4 + $0x4c] sm:$0xf0]  ;;  %v1803_v59 = vld [vmem:[%s2225_s4 + $0x44] sm:$0xf]  ;;  %v1484_v63 = vor.u32 %v1808_v55, %v1481_v56 }
  0x24   : > { %v1457_v60 = vld [vmem:[%s2225_s4 + $0x50] sm:$0xf0]  ;;  %v1463_v61 = vld [vmem:[%s2225_s4 + $0x48] sm:$0xf]  ;;  %v1806_v62 = vld [vmem:[%s2225_s4 + $0x54] sm:$0xf0]  ;;  %v1456_v0 = vor.u32 %v1805_v58, %v1455_v57 }
  0x25   : > { %846 = vmatpush.bf16.msra.mxu0 %v1862_v19  ;;  %v1460_v1 = vor.u32 %v1803_v59, %v1457_v60  ;;  %v1464_v2 = vor.u32 %v1806_v62, %v1463_v61  ;;  %v1812_v3 = vld [vmem:[%s2225_s4 + $0x8c] sm:$0xf]  ;;  %v1497_v4 = vld [vmem:[%s2225_s4 + $0x98] sm:$0xf0]  ;;  %v1471_v5 = vld [vmem:[%s2225_s4 + $0x60] sm:$0xf] }
  0x26   : > { %935 = vmatpush.bf16.msra.mxu1 %v1870_v20  ;;  %v1809_v6 = vld [vmem:[%s2225_s4 + $0x6c] sm:$0xf0]  ;;  %v1807_v7 = vld [vmem:[%s2225_s4 + $0x64] sm:$0xf]  ;;  %v1473_v8 = vld [vmem:[%s2225_s4 + $0x70] sm:$0xf0]  ;;  %v1500_v11 = vor.u32 %v1812_v3, %v1497_v4 }
  0x27   : > { %1024 = vmatpush.bf16.msra.mxu2 %v1878_v21  ;;  %v1479_v9 = vld [vmem:[%s2225_s4 + $0x68] sm:$0xf]  ;;  %v1810_v10 = vld [vmem:[%s2225_s4 + $0x74] sm:$0xf0]  ;;  %v1472_v12 = vor.u32 %v1809_v6, %v1471_v5  ;;  %v1476_v13 = vor.u32 %v1807_v7, %v1473_v8  ;;  %v1816_v15 = vld [vmem:[%s2225_s4 + $0xac] sm:$0xf] }
  0x28   : > { %v1480_v14 = vor.u32 %v1810_v10, %v1479_v9  ;;  %v1513_v16 = vld [vmem:[%s2225_s4 + $0xb8] sm:$0xf0]  ;;  %v1487_v17 = vld [vmem:[%s2225_s4 + $0x80] sm:$0xf]  ;;  %v1813_v18 = vld [vmem:[%s2225_s4 + $0x8c] sm:$0xf0] }
  0x29   : > { %847 = vmatpush.bf16.msra.mxu0 %v1861_v22  ;;  %v1811_v19 = vld [vmem:[%s2225_s4 + $0x84] sm:$0xf]  ;;  %v1489_v20 = vld [vmem:[%s2225_s4 + $0x90] sm:$0xf0]  ;;  %v1495_v21 = vld [vmem:[%s2225_s4 + $0x88] sm:$0xf] }
  0x2a   : > { %936 = vmatpush.bf16.msra.mxu1 %v1869_v23  ;;  %v1814_v22 = vld [vmem:[%s2225_s4 + $0x94] sm:$0xf0]  ;;  %v1516_v23 = vor.u32 %v1816_v15, %v1513_v16  ;;  %v1529_v28 = vld [vmem:[%s2225_s4 + $0xd8] sm:$0xf0]  ;;  %v1503_v29 = vld [vmem:[%s2225_s4 + $0xa0] sm:$0xf] }
  0x2b   : > { %1025 = vmatpush.bf16.msra.mxu2 %v1877_v24  ;;  %v1488_v24 = vor.u32 %v1813_v18, %v1487_v17  ;;  %v1505_v32 = vld [vmem:[%s2225_s4 + $0xb0] sm:$0xf0]  ;;  %v1511_v33 = vld [vmem:[%s2225_s4 + $0xa8] sm:$0xf]  ;;  %v1818_v34 = vld [vmem:[%s2225_s4 + $0xb4] sm:$0xf0] }
  0x2c   : > { %v1512_v38 = vor.u32 %v1818_v34, %v1511_v33  ;;  %v1819_v43 = vld [vmem:[%s2225_s4 + $0xc4] sm:$0xf]  ;;  %v1521_v44 = vld [vmem:[%s2225_s4 + $0xd0] sm:$0xf0]  ;;  %v1527_v45 = vld [vmem:[%s2225_s4 + $0xc8] sm:$0xf] }
  0x2d   : > { %848 = vmatpush.bf16.msra.mxu0 %v1860_v25  ;;  %v1492_v25 = vor.u32 %v1811_v19, %v1489_v20  ;;  %v1822_v46 = vld [vmem:[%s2225_s4 + $0xd4] sm:$0xf0]  ;;  %v1524_v49 = vor.u32 %v1819_v43, %v1521_v44  ;;  %v1823_v55 = vld [vmem:[%s2225_s4 + $0xe4] sm:$0xf]  ;;  %v1537_v56 = vld [vmem:[%s2225_s4 + $0xf0] sm:$0xf0] }
  0x2e   : > { %937 = vmatpush.bf16.msra.mxu1 %v1868_v26  ;;  %v1496_v26 = vor.u32 %v1814_v22, %v1495_v21  ;;  %v1528_v50 = vor.u32 %v1822_v46, %v1527_v45  ;;  %v1543_v57 = vld [vmem:[%s2225_s4 + $0xe8] sm:$0xf]  ;;  %v1826_v58 = vld [vmem:[%s2225_s4 + $0xf4] sm:$0xf0]  ;;  %v1540_v61 = vor.u32 %v1823_v55, %v1537_v56  ;;  %v1829_v3 = vld [vmem:[%s2225_s4 + $0x10c] sm:$0xf0] }
  0x2f   : > { %1026 = vmatpush.bf16.msra.mxu2 %v1876_v27  ;;  %1774 = vmatmul.msk.bf16.gmra.mxu3 %vm789_vm1, %v1452_v39  ;;  %v1820_v27 = vld [vmem:[%s2225_s4 + $0xcc] sm:$0xf]  ;;  %v1544_v62 = vor.u32 %v1826_v58, %v1543_v57  ;;  %v1827_v4 = vld [vmem:[%s2225_s4 + $0x104] sm:$0xf]  ;;  %v1553_v5 = vld [vmem:[%s2225_s4 + $0x110] sm:$0xf0] }
  0x30   : > { %v1532_v35 = vor.u32 %v1820_v27, %v1529_v28  ;;  %v1824_v39 = vld [vmem:[%s2225_s4 + $0xec] sm:$0xf]  ;;  %v1559_v7 = vld [vmem:[%s2225_s4 + $0x108] sm:$0xf]  ;;  %v1830_v8 = vld [vmem:[%s2225_s4 + $0x114] sm:$0xf0] }
  0x31   : > { %849 = vmatpush.bf16.msra.mxu0 %v1859_v30  ;;  %v1817_v30 = vld [vmem:[%s2225_s4 + $0xac] sm:$0xf0]  ;;  %v1560_v15 = vor.u32 %v1830_v8, %v1559_v7  ;;  %v1831_v28 = vld [vmem:[%s2225_s4 + $0x124] sm:$0xf]  ;;  %v1609_v55 = vld [vmem:[%s2225_s4 + $0x178] sm:$0xf0] }
  0x32   : > { %938 = vmatpush.bf16.msra.mxu1 %v1867_v31  ;;  %v1815_v31 = vld [vmem:[%s2225_s4 + $0xa4] sm:$0xf]  ;;  %v1833_v27 = vld [vmem:[%s2225_s4 + $0x12c] sm:$0xf0]  ;;  %v1583_v56 = vld [vmem:[%s2225_s4 + $0x140] sm:$0xf] }
  0x33   : > { %1027 = vmatpush.bf16.msra.mxu2 %v1875_v36  ;;  %v1504_v36 = vor.u32 %v1817_v30, %v1503_v29  ;;  %v1508_v37 = vor.u32 %v1815_v31, %v1505_v32  ;;  %v1569_v29 = vld [vmem:[%s2225_s4 + $0x130] sm:$0xf0]  ;;  %v1575_v31 = vld [vmem:[%s2225_s4 + $0x128] sm:$0xf]  ;;  %v1834_v32 = vld [vmem:[%s2225_s4 + $0x134] sm:$0xf0] }
  0x34   : > { %850 = vmatmul.bf16.vlgmr.msra.gmra.mxu0 %v1424_v40  ;;  %v1545_v40 = vld [vmem:[%s2225_s4 + $0xf8] sm:$0xf0]  ;;  %v1837_v58 = vld [vmem:[%s2225_s4 + $0x14c] sm:$0xf0] }
  0x35   : > { %939 = vmatmul.bf16.vlgmr.msra.gmra.mxu1 %v1428_v41  ;;  %v1519_v41 = vld [vmem:[%s2225_s4 + $0xc0] sm:$0xf]  ;;  %v1548_v47 = vor.u32 %v1824_v39, %v1545_v40 }
  0x36   : > { %1028 = vmatmul.bf16.vlgmr.msra.gmra.mxu2 %v1432_v42  ;;  %v1821_v42 = vld [vmem:[%s2225_s4 + $0xcc] sm:$0xf0] }
  0x37   : > { %v1520_v48 = vor.u32 %v1821_v42, %v1519_v41  ;;  %v1576_v42 = vor.u32 %v1834_v32, %v1575_v31  ;;  %v1842_v31 = vld [vmem:[%s2225_s4 + $0x174] sm:$0xf0] }
  0x3f   : > { %1775 = vmatmul.msk.bf16.gmra.mxu3 %vm789_vm1, %v1468_v51  ;;  %v1828_v51 = vld [vmem:[%s2225_s4 + $0x10c] sm:$0xf] }
  0x44   : > { %855 = vmatmul.bf16.gmra.mxu0 %v1440_v52  ;;  %v1561_v52 = vld [vmem:[%s2225_s4 + $0x118] sm:$0xf0] }
  0x45   : > { %944 = vmatmul.bf16.gmra.mxu1 %v1444_v53  ;;  %v1535_v53 = vld [vmem:[%s2225_s4 + $0xe0] sm:$0xf]  ;;  %v1564_v59 = vor.u32 %v1828_v51, %v1561_v52 }
  0x46   : > { %1033 = vmatmul.bf16.gmra.mxu2 %v1448_v54  ;;  %v1825_v54 = vld [vmem:[%s2225_s4 + $0xec] sm:$0xf0] }
  0x47   : > { %v1536_v60 = vor.u32 %v1825_v54, %v1535_v53  ;;  %v1840_v54 = vld [vmem:[%s2225_s4 + $0x16c] sm:$0xf] }
  0x4f   : > { %1776 = vmatmul.msk.bf16.gmra.mxu3 %vm789_vm1, %v1484_v63 }
  0x54   : > { %860 = vmatmul.bf16.gmra.mxu0 %v1456_v0  ;;  %v1832_v0 = vld [vmem:[%s2225_s4 + $0x12c] sm:$0xf] }
  0x55   : > { %949 = vmatmul.bf16.gmra.mxu1 %v1460_v1  ;;  %v1577_v1 = vld [vmem:[%s2225_s4 + $0x138] sm:$0xf0] }
  0x56   : > { %1038 = vmatmul.bf16.gmra.mxu2 %v1464_v2  ;;  %v1551_v2 = vld [vmem:[%s2225_s4 + $0x100] sm:$0xf]  ;;  %v1580_v9 = vor.u32 %v1832_v0, %v1577_v1  ;;  %v1612_v0 = vor.u32 %v1840_v54, %v1609_v55  ;;  %v1641_v54 = vld [vmem:[%s2225_s4 + $0x1b8] sm:$0xf0] }
  0x57   : > { %v1552_v10 = vor.u32 %v1829_v3, %v1551_v2  ;;  %v1584_v3 = vor.u32 %v1837_v58, %v1583_v56  ;;  %v1615_v55 = vld [vmem:[%s2225_s4 + $0x180] sm:$0xf]  ;;  %v1843_v58 = vld [vmem:[%s2225_s4 + $0x184] sm:$0xf] }
  0x5f   : > { %1777 = vmatmul.msk.bf16.gmra.mxu3 %vm789_vm1, %v1500_v11  ;;  %v1556_v11 = vor.u32 %v1827_v4, %v1553_v5 }
  0x64   : > { %865 = vmatmul.bf16.gmra.mxu0 %v1472_v12  ;;  %v2361_v12 = vld [vmem:[%s2518_s2] ss:$0 sm:$0xff] }
  0x65   : > { %954 = vmatmul.bf16.gmra.mxu1 %v1476_v13 }
  0x66   : > { %1043 = vmatmul.bf16.gmra.mxu2 %v1480_v14 }
  0x6f   : > { %1778 = vmatmul.msk.bf16.gmra.mxu3 %vm789_vm1, %v1516_v23  ;;  %v1836_v23 = vld [vmem:[%s2225_s4 + $0x14c] sm:$0xf] }
  0x74   : > { %870 = vmatmul.bf16.gmra.mxu0 %v1488_v24  ;;  %v1593_v24 = vld [vmem:[%s2225_s4 + $0x158] sm:$0xf0] }
  0x75   : > { %959 = vmatmul.bf16.gmra.mxu1 %v1492_v25  ;;  %v1567_v25 = vld [vmem:[%s2225_s4 + $0x120] sm:$0xf]  ;;  %v1596_v33 = vor.u32 %v1836_v23, %v1593_v24  ;;  %v1625_v23 = vld [vmem:[%s2225_s4 + $0x198] sm:$0xf0] }
  0x76   : > { %1048 = vmatmul.bf16.gmra.mxu2 %v1496_v26  ;;  %v1599_v24 = vld [vmem:[%s2225_s4 + $0x160] sm:$0xf] }
  0x7f   : > { %1779 = vmatmul.msk.bf16.gmra.mxu3 %vm789_vm1, %v1532_v35 }
  0x84   : > { %875 = vmatmul.bf16.gmra.mxu0 %v1504_v36  ;;  %v1568_v36 = vor.u32 %v1833_v27, %v1567_v25  ;;  %v1839_v27 = vld [vmem:[%s2225_s4 + $0x164] sm:$0xf] }
  0x85   : > { %964 = vmatmul.bf16.gmra.mxu1 %v1508_v37  ;;  %v1572_v37 = vor.u32 %v1831_v28, %v1569_v29  ;;  %v1601_v28 = vld [vmem:[%s2225_s4 + $0x170] sm:$0xf0] }
  0x86   : > { %1053 = vmatmul.bf16.gmra.mxu2 %v1512_v38 }
  0x8f   : > { %1780 = vmatmul.msk.bf16.gmra.mxu3 %vm789_vm1, %v1548_v47 }
  0x94   : > { %880 = vmatmul.bf16.gmra.mxu0 %v1520_v48 }
  0x95   : > { %969 = vmatmul.bf16.gmra.mxu1 %v1524_v49 }
  0x96   : > { %1058 = vmatmul.bf16.gmra.mxu2 %v1528_v50 }
  0x9f   : > { %1781 = vmatmul.msk.bf16.gmra.mxu3 %vm789_vm1, %v1564_v59  ;;  %v1835_v59 = vld [vmem:[%s2225_s4 + $0x144] sm:$0xf] }
  0xa2   : > { %v1118_v63 = vpop.f32.mrf.mxu3 }
  0xa4   : > { %885 = vmatmul.bf16.gmra.mxu0 %v1536_v60  ;;  %v1585_v60 = vld [vmem:[%s2225_s4 + $0x150] sm:$0xf0] }
  0xa5   : > { %974 = vmatmul.bf16.gmra.mxu1 %v1540_v61  ;;  %v1588_v4 = vor.u32 %v1835_v59, %v1585_v60  ;;  %v1617_v59 = vld [vmem:[%s2225_s4 + $0x190] sm:$0xf0] }
  0xa6   : > { %1063 = vmatmul.bf16.gmra.mxu2 %v1544_v62  ;;  %v1591_v62 = vld [vmem:[%s2225_s4 + $0x148] sm:$0xf] }
  0xaa   : > { %v1120_v6 = vpop.f32.mrf.mxu3 }
  0xaf   : > { %1782 = vmatmul.msk.bf16.gmra.mxu3 %vm789_vm1, %v1580_v9 }
  0xb1   : > { %v851_v13 = vpop.f32.mrf.mxu0 }
  0xb2   : > { %v940_v14 = vpop.f32.mrf.mxu1  ;;  %v852_v16 = vadd.f32 %v2361_v12, %v851_v13  ;;  %v1123_v17 = vpop.f32.mrf.mxu3 }
  0xb4   : > { %890 = vmatmul.bf16.gmra.mxu0 %v1552_v10  ;;  %v941_v19 = vadd.f32 %v940_v14, %v852_v16 }
  0xb5   : > { %979 = vmatmul.bf16.gmra.mxu1 %v1556_v11 }
  0xb6   : > { %1068 = vmatmul.bf16.gmra.mxu2 %v1560_v15 }
  0xb9   : > { %v1029_v18 = vpop.f32.mrf.mxu2  ;;  %v853_v20 = vpop.f32.mrf.mxu0 }
  0xba   : > { %v942_v21 = vpop.f32.mrf.mxu1  ;;  %v854_v22 = vadd.f32 %v2361_v12, %v853_v20  ;;  %v1030_v26 = vadd.f32 %v1029_v18, %v941_v19  ;;  %v1125_v30 = vpop.f32.mrf.mxu3 }
  0xbc   : > { %v943_v34 = vadd.f32 %v942_v21, %v854_v22  ;;  %v1119_v38 = vadd.f32 %v1118_v63, %v1030_v26  ;;  %v1838_v63 = vld [vmem:[%s2225_s4 + $0x154] sm:$0xf0]  ;;  %v1844_v22 = vld [vmem:[%s2225_s4 + $0x18c] sm:$0xf]  ;;  %v1841_v26 = vld [vmem:[%s2225_s4 + $0x16c] sm:$0xf0] }
  0xbd   : > { %v1592_v9 = vor.u32 %v1838_v63, %v1591_v62  ;;  %v1628_v32 = vor.u32 %v1844_v22, %v1625_v23  ;;  %v1846_v62 = vld [vmem:[%s2225_s4 + $0x194] sm:$0xf0]  ;;  %v1657_v22 = vld [vmem:[%s2225_s4 + $0x1d8] sm:$0xf0]  ;;  %v1631_v23 = vld [vmem:[%s2225_s4 + $0x1a0] sm:$0xf] }
  0xbe   : > { %v1198_v44 = vmax.f32 %v1119_v38, 0.0 }
  0xbf   : > { %1783 = vmatmul.msk.bf16.gmra.mxu3 %vm789_vm1, %v1596_v33 }
  0xc1   : > { %v1031_v35 = vpop.f32.mrf.mxu2  ;;  %v856_v40 = vpop.f32.mrf.mxu0 }
  0xc2   : > { %v1032_v39 = vadd.f32 %v1031_v35, %v943_v34  ;;  %v945_v41 = vpop.f32.mrf.mxu1  ;;  %v857_v46 = vadd.f32 %v2361_v12, %v856_v40  ;;  %v1128_v47 = vpop.f32.mrf.mxu3  ;;  %v1600_v35 = vor.u32 %v1841_v26, %v1599_v24  ;;  %v1847_v26 = vld [vmem:[%s2225_s4 + $0x1a4] sm:$0xf] }
  0xc4   : > { %v1121_v43 = vadd.f32 %v1120_v6, %v1032_v39  ;;  %895 = vmatmul.bf16.gmra.mxu0 %v1568_v36  ;;  %v946_v50 = vadd.f32 %v945_v41, %v857_v46  ;;  %v1604_v36 = vor.u32 %v1839_v27, %v1601_v28  ;;  %v1633_v27 = vld [vmem:[%s2225_s4 + $0x1b0] sm:$0xf0] }
  0xc5   : > { %984 = vmatmul.bf16.gmra.mxu1 %v1572_v37 }
  0xc6   : > { %v1199_v45 = vmax.f32 %v1121_v43, 0.0  ;;  %1073 = vmatmul.bf16.gmra.mxu2 %v1576_v42 }
  0xc8   : > { %v1887_v48 = vpack.c.bf16 %v1199_v45, %v1198_v44 }
  0xc9   : > { %v1034_v49 = vpop.f32.mrf.mxu2  ;;  %v858_v51 = vpop.f32.mrf.mxu0 }
  0xca   : > { %1888 = vst [vmem:[%s2379_s9] sm:$0xff] %v1887_v48   ;;  %v947_v52 = vpop.f32.mrf.mxu1  ;;  %v859_v53 = vadd.f32 %v2361_v12, %v858_v51  ;;  %v1035_v57 = vadd.f32 %v1034_v49, %v946_v50  ;;  %v1130_v61 = vpop.f32.mrf.mxu3 }
  0xcc   : > { %v948_v1 = vadd.f32 %v947_v52, %v859_v53  ;;  %v1124_v5 = vadd.f32 %v1123_v17, %v1035_v57  ;;  %v1848_v53 = vld [vmem:[%s2225_s4 + $0x1ac] sm:$0xf]  ;;  %v1845_v57 = vld [vmem:[%s2225_s4 + $0x18c] sm:$0xf0] }
  0xcd   : > { %v1644_v63 = vor.u32 %v1848_v53, %v1641_v54  ;;  %v1673_v53 = vld [vmem:[%s2225_s4 + $0x1f8] sm:$0xf0]  ;;  %v1647_v54 = vld [vmem:[%s2225_s4 + $0x1c0] sm:$0xf] }
  0xce   : > { %v1200_v11 = vmax.f32 %v1124_v5, 0.0 }
  0xcf   : > { %1784 = vmatmul.msk.bf16.gmra.mxu3 %vm789_vm1, %v1612_v0 }
  0xd1   : > { %v1036_v2 = vpop.f32.mrf.mxu2  ;;  %v861_v7 = vpop.f32.mrf.mxu0 }
  0xd2   : > { %v1037_v6 = vadd.f32 %v1036_v2, %v948_v1  ;;  %v950_v8 = vpop.f32.mrf.mxu1  ;;  %v862_v14 = vadd.f32 %v2361_v12, %v861_v7  ;;  %v1133_v15 = vpop.f32.mrf.mxu3  ;;  %v1616_v2 = vor.u32 %v1845_v57, %v1615_v55  ;;  %v1851_v57 = vld [vmem:[%s2225_s4 + $0x1c4] sm:$0xf] }
  0xd4   : > { %v1126_v10 = vadd.f32 %v1125_v30, %v1037_v6  ;;  %900 = vmatmul.bf16.gmra.mxu0 %v1584_v3  ;;  %v951_v18 = vadd.f32 %v950_v8, %v862_v14  ;;  %v1607_v30 = vld [vmem:[%s2225_s4 + $0x168] sm:$0xf]  ;;  %v1620_v3 = vor.u32 %v1843_v58, %v1617_v59  ;;  %v1649_v58 = vld [vmem:[%s2225_s4 + $0x1d0] sm:$0xf0] }
  0xd5   : > { %989 = vmatmul.bf16.gmra.mxu1 %v1588_v4  ;;  %v1608_v41 = vor.u32 %v1842_v31, %v1607_v30  ;;  %v1850_v30 = vld [vmem:[%s2225_s4 + $0x1b4] sm:$0xf0] }
  0xd6   : > { %v1201_v13 = vmax.f32 %v1126_v10, 0.0  ;;  %1078 = vmatmul.bf16.gmra.mxu2 %v1592_v9 }
  0xd8   : > { %v1892_v16 = vpack.c.bf16 %v1201_v13, %v1200_v11 }
  0xd9   : > { %v1039_v17 = vpop.f32.mrf.mxu2  ;;  %v863_v19 = vpop.f32.mrf.mxu0 }
  0xda   : > { %1964 = vst [vmem:[%s2379_s9 + $0x8] sm:$0xff] %v1892_v16   ;;  %v952_v20 = vpop.f32.mrf.mxu1  ;;  %v864_v21 = vadd.f32 %v2361_v12, %v863_v19  ;;  %v1040_v25 = vadd.f32 %v1039_v17, %v951_v18  ;;  %v1135_v29 = vpop.f32.mrf.mxu3 }
  0xdc   : > { %v953_v33 = vadd.f32 %v952_v20, %v864_v21  ;;  %v1129_v37 = vadd.f32 %v1128_v47, %v1040_v25  ;;  %v1852_v21 = vld [vmem:[%s2225_s4 + $0x1cc] sm:$0xf]  ;;  %v1849_v25 = vld [vmem:[%s2225_s4 + $0x1ac] sm:$0xf0] }
  0xdd   : > { %v1660_v31 = vor.u32 %v1852_v21, %v1657_v22  ;;  %v1857_v22 = vld [vmem:[%s2225_s4 + $0x1ec] sm:$0xf0] }
  0xde   : > { %v1202_v43 = vmax.f32 %v1129_v37, 0.0 }
  0xdf   : > { %1785 = vmatmul.msk.bf16.gmra.mxu3 %vm789_vm1, %v1628_v32 }
  0xe1   : > { %v1041_v34 = vpop.f32.mrf.mxu2  ;;  %v866_v39 = vpop.f32.mrf.mxu0 }
  0xe2   : > { %v1042_v38 = vadd.f32 %v1041_v34, %v953_v33  ;;  %v955_v40 = vpop.f32.mrf.mxu1  ;;  %v867_v45 = vadd.f32 %v2361_v12, %v866_v39  ;;  %v1138_v46 = vpop.f32.mrf.mxu3  ;;  %v1632_v34 = vor.u32 %v1849_v25, %v1631_v23  ;;  %v1855_v23 = vld [vmem:[%s2225_s4 + $0x1e4] sm:$0xf] }
  0xe4   : > { %v1131_v42 = vadd.f32 %v1130_v61, %v1042_v38  ;;  %905 = vmatmul.bf16.gmra.mxu0 %v1600_v35  ;;  %v956_v49 = vadd.f32 %v955_v40, %v867_v45  ;;  %v1623_v61 = vld [vmem:[%s2225_s4 + $0x188] sm:$0xf]  ;;  %v1636_v35 = vor.u32 %v1847_v26, %v1633_v27  ;;  %v1858_v27 = vld [vmem:[%s2225_s4 + $0x1f4] sm:$0xf0] }
  0xe5   : > { %994 = vmatmul.bf16.gmra.mxu1 %v1604_v36  ;;  %v1624_v8 = vor.u32 %v1846_v62, %v1623_v61  ;;  %v1854_v61 = vld [vmem:[%s2225_s4 + $0x1d4] sm:$0xf0]  ;;  %v1671_v26 = vld [vmem:[%s2225_s4 + $0x1e8] sm:$0xf] }
  0xe6   : > { %v1203_v44 = vmax.f32 %v1131_v42, 0.0  ;;  %1083 = vmatmul.bf16.gmra.mxu2 %v1608_v41 }
  0xe8   : > { %v1897_v47 = vpack.c.bf16 %v1203_v44, %v1202_v43 }
  0xe9   : > { %v1044_v48 = vpop.f32.mrf.mxu2  ;;  %v868_v50 = vpop.f32.mrf.mxu0 }
  0xea   : > { %1965 = vst [vmem:[%s2379_s9 + $0x10] sm:$0xff] %v1897_v47   ;;  %v957_v51 = vpop.f32.mrf.mxu1  ;;  %v869_v52 = vadd.f32 %v2361_v12, %v868_v50  ;;  %v1045_v56 = vadd.f32 %v1044_v48, %v956_v49  ;;  %v1140_v60 = vpop.f32.mrf.mxu3 }
  0xec   : > { %v958_v0 = vadd.f32 %v957_v51, %v869_v52  ;;  %v1134_v4 = vadd.f32 %v1133_v15, %v1045_v56  ;;  %v1856_v52 = vld [vmem:[%s2225_s4 + $0x1ec] sm:$0xf]  ;;  %v1853_v56 = vld [vmem:[%s2225_s4 + $0x1cc] sm:$0xf0] }
  0xed   : > { %v1676_v62 = vor.u32 %v1856_v52, %v1673_v53 }
  0xee   : > { %v1204_v10 = vmax.f32 %v1134_v4, 0.0 }
  0xef   : > { %1786 = vmatmul.msk.bf16.gmra.mxu3 %vm789_vm1, %v1644_v63 }
  0xf1   : > { %v1046_v1 = vpop.f32.mrf.mxu2  ;;  %v871_v6 = vpop.f32.mrf.mxu0 }
  0xf2   : > { %v1047_v5 = vadd.f32 %v1046_v1, %v958_v0  ;;  %v960_v7 = vpop.f32.mrf.mxu1  ;;  %v872_v13 = vadd.f32 %v2361_v12, %v871_v6  ;;  %v1143_v14 = vpop.f32.mrf.mxu3  ;;  %v1648_v1 = vor.u32 %v1853_v56, %v1647_v54 }
  0xf4   : > { %v1136_v9 = vadd.f32 %v1135_v29, %v1047_v5  ;;  %910 = vmatmul.bf16.gmra.mxu0 %v1616_v2  ;;  %v961_v17 = vadd.f32 %v960_v7, %v872_v13  ;;  %v1639_v29 = vld [vmem:[%s2225_s4 + $0x1a8] sm:$0xf]  ;;  %v1652_v2 = vor.u32 %v1851_v57, %v1649_v58 }
  0xf5   : > { %999 = vmatmul.bf16.gmra.mxu1 %v1620_v3  ;;  %v1640_v40 = vor.u32 %v1850_v30, %v1639_v29 }
  0xf6   : > { %v1205_v11 = vmax.f32 %v1136_v9, 0.0  ;;  %1088 = vmatmul.bf16.gmra.mxu2 %v1624_v8 }
  0xf8   : > { %v1902_v15 = vpack.c.bf16 %v1205_v11, %v1204_v10 }
  0xf9   : > { %v1049_v16 = vpop.f32.mrf.mxu2  ;;  %v873_v18 = vpop.f32.mrf.mxu0 }
  0xfa   : > { %1966 = vst [vmem:[%s2379_s9 + $0x18] sm:$0xff] %v1902_v15   ;;  %v962_v19 = vpop.f32.mrf.mxu1  ;;  %v874_v20 = vadd.f32 %v2361_v12, %v873_v18  ;;  %v1050_v24 = vadd.f32 %v1049_v16, %v961_v17  ;;  %v1145_v28 = vpop.f32.mrf.mxu3 }
  0xfc   : > { %v963_v32 = vadd.f32 %v962_v19, %v874_v20  ;;  %v1139_v36 = vadd.f32 %v1138_v46, %v1050_v24  ;;  %v1663_v20 = vld [vmem:[%s2225_s4 + $0x1e0] sm:$0xf]  ;;  %v1665_v24 = vld [vmem:[%s2225_s4 + $0x1f0] sm:$0xf0] }
  0xfd   : > { %v1664_v30 = vor.u32 %v1857_v22, %v1663_v20 }
  0xfe   : > { %v1206_v42 = vmax.f32 %v1139_v36, 0.0  ;;  %v1672_v36 = vor.u32 %v1858_v27, %v1671_v26 }
  0xff   : > { %1787 = vmatmul.msk.bf16.gmra.mxu3 %vm789_vm1, %v1660_v31  ;;  %v1668_v31 = vor.u32 %v1855_v23, %v1665_v24 }
 0x101   : > { %v1051_v33 = vpop.f32.mrf.mxu2  ;;  %v876_v38 = vpop.f32.mrf.mxu0 }
 0x102   : > { %v1052_v37 = vadd.f32 %v1051_v33, %v963_v32  ;;  %v965_v39 = vpop.f32.mrf.mxu1  ;;  %v877_v44 = vadd.f32 %v2361_v12, %v876_v38  ;;  %v1148_v45 = vpop.f32.mrf.mxu3 }
 0x104   : > { %v1141_v41 = vadd.f32 %v1140_v60, %v1052_v37  ;;  %915 = vmatmul.bf16.gmra.mxu0 %v1632_v34  ;;  %v966_v48 = vadd.f32 %v965_v39, %v877_v44  ;;  %v1655_v60 = vld [vmem:[%s2225_s4 + $0x1c8] sm:$0xf]  ;;  %s1883_s4 = sshll.u32 %s2107_s15, 7  ;;  %s1295_s15 = scalar_lea.sflag [#allocation3], %s202_s7 }
 0x105   : > { %1004 = vmatmul.bf16.gmra.mxu1 %v1636_v35  ;;  %v1656_v7 = vor.u32 %v1854_v61, %v1655_v60  ;;  %s1307_s18 = scalar_lea.hbm %s2519_s3, %s1883_s4 }
 0x106   : > { %v1207_v43 = vmax.f32 %v1141_v41, 0.0  ;;  %1093 = vmatmul.bf16.gmra.mxu2 %v1640_v40  ;;  %s1310_s21 = sshll.u32 %s1307_s18, 4  ;;  %s1311_s21 = int_to_ptr.hbm [resolvable:$true] %s1310_s21 }
 0x107   : > { %s2051_s23 = sshra.s32 %s1311_s21, 4  ;;  %s2052_s23 = int_to_ptr.hbm [resolvable:$true] %s2051_s23 }
 0x108   : > { %v1907_v46 = vpack.c.bf16 %v1207_v43, %v1206_v42  ;;  %s2053_s26 = scalar_lea.hbm %s2052_s23, 128  ;;  %p2058_p1 = scmp.lt.s32.totalorder %s2052_s23, %s2519_s3 }
 0x109   : > { %v1054_v47 = vpop.f32.mrf.mxu2  ;;  %v878_v49 = vpop.f32.mrf.mxu0  ;;  %p2054_p12 = scmp.ne.s32.totalorder %s2052_s23, %s2053_s26  ;;  %p2059_p2 = scmp.lt.s32.totalorder %s2057_s29, %s2053_s26 }
 0x10a   : > { %1967 = vst [vmem:[%s2379_s9 + $0x20] sm:$0xff] %v1907_v46   ;;  %v967_v50 = vpop.f32.mrf.mxu1  ;;  %v879_v51 = vadd.f32 %v2361_v12, %v878_v49  ;;  %v1055_v55 = vadd.f32 %v1054_v47, %v966_v48  ;;  %v1150_v59 = vpop.f32.mrf.mxu3 }
 0x10b   : > { %p2055_p13 = pnand %p2054_p12, %p2179_p4  ;;  %p2060_p3 = por %p2059_p2, %p2058_p1 }
 0x10c   : > { %v968_v63 = vadd.f32 %v967_v50, %v879_v51  ;;  %v1144_v3 = vadd.f32 %v1143_v14, %v1055_v55 }
 0x10d   : > { %p2056_p0 = pneg %p2055_p13 }
 0x10e   : > { %v1208_v9 = vmax.f32 %v1144_v3, 0.0 }
 0x10f   : > { %1788 = vmatmul.msk.bf16.gmra.mxu3 %vm789_vm1, %v1676_v62  ;;  %p2061_p5 = pnand %p2060_p3, %p2056_p0 }
 0x111   : > { %v1056_v0 = vpop.f32.mrf.mxu2  ;;  %v881_v5 = vpop.f32.mrf.mxu0 }
 0x112   : > { %v1057_v4 = vadd.f32 %v1056_v0, %v968_v63  ;;  %v970_v6 = vpop.f32.mrf.mxu1  ;;  %v882_v11 = vadd.f32 %v2361_v12, %v881_v5  ;;  %v1153_v13 = vpop.f32.mrf.mxu3 }
 0x114   : > { %v1146_v8 = vadd.f32 %v1145_v28, %v1057_v4  ;;  %920 = vmatmul.bf16.gmra.mxu0 %v1648_v1  ;;  %v971_v16 = vadd.f32 %v970_v6, %v882_v11 }
 0x115   : > { %1009 = vmatmul.bf16.gmra.mxu1 %v1652_v2 }
 0x116   : > { %v1209_v10 = vmax.f32 %v1146_v8, 0.0  ;;  %1098 = vmatmul.bf16.gmra.mxu2 %v1656_v7 }
 0x118   : > { %v1912_v14 = vpack.c.bf16 %v1209_v10, %v1208_v9 }
 0x119   : > { %v1059_v15 = vpop.f32.mrf.mxu2  ;;  %v883_v17 = vpop.f32.mrf.mxu0 }
 0x11a   : > { %1968 = vst [vmem:[%s2379_s9 + $0x28] sm:$0xff] %v1912_v14   ;;  %v972_v18 = vpop.f32.mrf.mxu1  ;;  %v884_v19 = vadd.f32 %v2361_v12, %v883_v17  ;;  %v1060_v21 = vadd.f32 %v1059_v15, %v971_v16  ;;  %v1155_v25 = vpop.f32.mrf.mxu3 }
 0x11c   : > { %v973_v28 = vadd.f32 %v972_v18, %v884_v19  ;;  %v1149_v32 = vadd.f32 %v1148_v45, %v1060_v21 }
 0x11e   : > { %v1210_v38 = vmax.f32 %v1149_v32, 0.0 }
 0x121   : > { %v1061_v29 = vpop.f32.mrf.mxu2  ;;  %v886_v34 = vpop.f32.mrf.mxu0 }
 0x122   : > { %v1062_v33 = vadd.f32 %v1061_v29, %v973_v28  ;;  %v975_v35 = vpop.f32.mrf.mxu1  ;;  %v887_v40 = vadd.f32 %v2361_v12, %v886_v34  ;;  %v1158_v41 = vpop.f32.mrf.mxu3 }
 0x124   : > { %v1151_v37 = vadd.f32 %v1150_v59, %v1062_v33  ;;  %925 = vmatmul.bf16.gmra.mxu0 %v1664_v30  ;;  %v976_v44 = vadd.f32 %v975_v35, %v887_v40 }
 0x125   : > { %1014 = vmatmul.bf16.gmra.mxu1 %v1668_v31 }
 0x126   : > { %v1211_v39 = vmax.f32 %v1151_v37, 0.0  ;;  %1103 = vmatmul.bf16.gmra.mxu2 %v1672_v36 }
 0x128   : > { %v1917_v42 = vpack.c.bf16 %v1211_v39, %v1210_v38 }
 0x129   : > { %v1064_v43 = vpop.f32.mrf.mxu2  ;;  %v888_v46 = vpop.f32.mrf.mxu0 }
 0x12a   : > { %1969 = vst [vmem:[%s2379_s9 + $0x30] sm:$0xff] %v1917_v42   ;;  %v977_v47 = vpop.f32.mrf.mxu1  ;;  %v889_v45 = vadd.f32 %v2361_v12, %v888_v46  ;;  %v1065_v48 = vadd.f32 %v1064_v43, %v976_v44  ;;  %v1160_v49 = vpop.f32.mrf.mxu3 }
 0x12c   : > { %v978_v50 = vadd.f32 %v977_v47, %v889_v45  ;;  %v1154_v52 = vadd.f32 %v1153_v13, %v1065_v48 }
 0x12e   : > { %v1212_v57 = vmax.f32 %v1154_v52, 0.0 }
 0x131   : > { %v1066_v51 = vpop.f32.mrf.mxu2  ;;  %v891_v54 = vpop.f32.mrf.mxu0 }
 0x132   : > { %v1067_v53 = vadd.f32 %v1066_v51, %v978_v50  ;;  %v980_v55 = vpop.f32.mrf.mxu1  ;;  %v892_v59 = vadd.f32 %v2361_v12, %v891_v54  ;;  %v1163_v60 = vpop.f32.mrf.mxu3 }
 0x134   : > { %v1156_v56 = vadd.f32 %v1155_v25, %v1067_v53  ;;  %v981_v63 = vadd.f32 %v980_v55, %v892_v59 }
 0x136   : > { %v1213_v58 = vmax.f32 %v1156_v56, 0.0 }
 0x138   : > { %v1922_v61 = vpack.c.bf16 %v1213_v58, %v1212_v57 }
 0x139   : > { %v1069_v62 = vpop.f32.mrf.mxu2  ;;  %v893_v0 = vpop.f32.mrf.mxu0 }
 0x13a   : > { %1970 = vst [vmem:[%s2379_s9 + $0x38] sm:$0xff] %v1922_v61   ;;  %v982_v1 = vpop.f32.mrf.mxu1  ;;  %v894_v2 = vadd.f32 %v2361_v12, %v893_v0  ;;  %v1070_v3 = vadd.f32 %v1069_v62, %v981_v63  ;;  %v1165_v4 = vpop.f32.mrf.mxu3 }
 0x13c   : > { %v983_v5 = vadd.f32 %v982_v1, %v894_v2  ;;  %v1159_v7 = vadd.f32 %v1158_v41, %v1070_v3 }
 0x13e   : > { %v1214_v13 = vmax.f32 %v1159_v7, 0.0 }
 0x141   : > { %v1071_v6 = vpop.f32.mrf.mxu2  ;;  %v896_v9 = vpop.f32.mrf.mxu0 }
 0x142   : > { %v1072_v8 = vadd.f32 %v1071_v6, %v983_v5  ;;  %v985_v10 = vpop.f32.mrf.mxu1  ;;  %v897_v15 = vadd.f32 %v2361_v12, %v896_v9  ;;  %v1168_v16 = vpop.f32.mrf.mxu3 }
 0x144   : > { %v1161_v11 = vadd.f32 %v1160_v49, %v1072_v8  ;;  %v986_v19 = vadd.f32 %v985_v10, %v897_v15 }
 0x146   : > { %v1215_v14 = vmax.f32 %v1161_v11, 0.0 }
 0x148   : > { %v1927_v17 = vpack.c.bf16 %v1215_v14, %v1214_v13 }
 0x149   : > { %v1074_v18 = vpop.f32.mrf.mxu2  ;;  %v898_v20 = vpop.f32.mrf.mxu0 }
 0x14a   : > { %1971 = vst [vmem:[%s2379_s9 + $0x40] sm:$0xff] %v1927_v17   ;;  %v987_v21 = vpop.f32.mrf.mxu1  ;;  %v899_v22 = vadd.f32 %v2361_v12, %v898_v20  ;;  %v1075_v23 = vadd.f32 %v1074_v18, %v986_v19  ;;  %v1170_v24 = vpop.f32.mrf.mxu3 }
 0x14c   : > { %v988_v25 = vadd.f32 %v987_v21, %v899_v22  ;;  %v1164_v27 = vadd.f32 %v1163_v60, %v1075_v23 }
 0x14e   : > { %v1216_v32 = vmax.f32 %v1164_v27, 0.0 }
 0x151   : > { %v1076_v26 = vpop.f32.mrf.mxu2  ;;  %v901_v29 = vpop.f32.mrf.mxu0 }
 0x152   : > { %v1077_v28 = vadd.f32 %v1076_v26, %v988_v25  ;;  %v990_v30 = vpop.f32.mrf.mxu1  ;;  %v902_v34 = vadd.f32 %v2361_v12, %v901_v29  ;;  %v1173_v37 = vpop.f32.mrf.mxu3 }
 0x154   : > { %v1166_v31 = vadd.f32 %v1165_v4, %v1077_v28  ;;  %v991_v38 = vadd.f32 %v990_v30, %v902_v34 }
 0x156   : > { %v1217_v33 = vmax.f32 %v1166_v31, 0.0 }
 0x158   : > { %v1932_v35 = vpack.c.bf16 %v1217_v33, %v1216_v32 }
 0x159   : > { %v1079_v36 = vpop.f32.mrf.mxu2  ;;  %v903_v39 = vpop.f32.mrf.mxu0 }
 0x15a   : > { %1972 = vst [vmem:[%s2379_s9 + $0x48] sm:$0xff] %v1932_v35   ;;  %v992_v40 = vpop.f32.mrf.mxu1  ;;  %v904_v41 = vadd.f32 %v2361_v12, %v903_v39  ;;  %v1080_v42 = vadd.f32 %v1079_v36, %v991_v38  ;;  %v1175_v49 = vpop.f32.mrf.mxu3 }
 0x15c   : > { %v993_v43 = vadd.f32 %v992_v40, %v904_v41  ;;  %v1169_v46 = vadd.f32 %v1168_v16, %v1080_v42 }
 0x15e   : > { %v1218_v51 = vmax.f32 %v1169_v46, 0.0 }
 0x161   : > { %v1081_v44 = vpop.f32.mrf.mxu2  ;;  %v906_v45 = vpop.f32.mrf.mxu0 }
 0x162   : > { %v1082_v47 = vadd.f32 %v1081_v44, %v993_v43  ;;  %v995_v48 = vpop.f32.mrf.mxu1  ;;  %v907_v53 = vadd.f32 %v2361_v12, %v906_v45  ;;  %v1178_v60 = vpop.f32.mrf.mxu3 }
 0x164   : > { %v1171_v50 = vadd.f32 %v1170_v24, %v1082_v47  ;;  %v996_v56 = vadd.f32 %v995_v48, %v907_v53 }
 0x166   : > { %v1219_v52 = vmax.f32 %v1171_v50, 0.0 }
 0x168   : > { %v1937_v54 = vpack.c.bf16 %v1219_v52, %v1218_v51 }
 0x169   : > { %v1084_v55 = vpop.f32.mrf.mxu2  ;;  %v908_v57 = vpop.f32.mrf.mxu0 }
 0x16a   : > { %1973 = vst [vmem:[%s2379_s9 + $0x50] sm:$0xff] %v1937_v54   ;;  %v997_v58 = vpop.f32.mrf.mxu1  ;;  %v909_v59 = vadd.f32 %v2361_v12, %v908_v57  ;;  %v1085_v61 = vadd.f32 %v1084_v55, %v996_v56  ;;  %v1180_v8 = vpop.f32.mrf.mxu3 }
 0x16c   : > { %v998_v62 = vadd.f32 %v997_v58, %v909_v59  ;;  %v1174_v0 = vadd.f32 %v1173_v37, %v1085_v61 }
 0x16e   : > { %v1220_v5 = vmax.f32 %v1174_v0, 0.0 }
 0x171   : > { %v1086_v63 = vpop.f32.mrf.mxu2  ;;  %v911_v2 = vpop.f32.mrf.mxu0 }
 0x172   : > { %v1087_v1 = vadd.f32 %v1086_v63, %v998_v62  ;;  %v1000_v3 = vpop.f32.mrf.mxu1  ;;  %v912_v7 = vadd.f32 %v2361_v12, %v911_v2  ;;  %v1183_v19 = vpop.f32.mrf.mxu3 }
 0x174   : > { %v1176_v4 = vadd.f32 %v1175_v49, %v1087_v1  ;;  %v1001_v11 = vadd.f32 %v1000_v3, %v912_v7 }
 0x176   : > { %v1221_v6 = vmax.f32 %v1176_v4, 0.0 }
 0x178   : > { %v1942_v9 = vpack.c.bf16 %v1221_v6, %v1220_v5 }
 0x179   : > { %v1089_v10 = vpop.f32.mrf.mxu2  ;;  %v913_v13 = vpop.f32.mrf.mxu0 }
 0x17a   : > { %1974 = vst [vmem:[%s2379_s9 + $0x58] sm:$0xff] %v1942_v9   ;;  %v1002_v14 = vpop.f32.mrf.mxu1  ;;  %v914_v15 = vadd.f32 %v2361_v12, %v913_v13  ;;  %v1090_v16 = vadd.f32 %v1089_v10, %v1001_v11  ;;  %v1185_v33 = vpop.f32.mrf.mxu3 }
 0x17c   : > { %v1003_v17 = vadd.f32 %v1002_v14, %v914_v15  ;;  %v1179_v20 = vadd.f32 %v1178_v60, %v1090_v16 }
 0x17e   : > { %v1222_v25 = vmax.f32 %v1179_v20, 0.0 }
 0x181   : > { %v1091_v18 = vpop.f32.mrf.mxu2  ;;  %v916_v22 = vpop.f32.mrf.mxu0 }
 0x182   : > { %v1092_v21 = vadd.f32 %v1091_v18, %v1003_v17  ;;  %v1005_v23 = vpop.f32.mrf.mxu1  ;;  %v917_v27 = vadd.f32 %v2361_v12, %v916_v22  ;;  %v1188_v43 = vpop.f32.mrf.mxu3 }
 0x184   : > { %v1181_v24 = vadd.f32 %v1180_v8, %v1092_v21  ;;  %v1006_v30 = vadd.f32 %v1005_v23, %v917_v27 }
 0x186   : > { %v1223_v26 = vmax.f32 %v1181_v24, 0.0 }
 0x188   : > { %v1947_v28 = vpack.c.bf16 %v1223_v26, %v1222_v25 }
 0x189   : > { %v1094_v29 = vpop.f32.mrf.mxu2  ;;  %v918_v31 = vpop.f32.mrf.mxu0 }
 0x18a   : > { %1975 = vst [vmem:[%s2379_s9 + $0x60] sm:$0xff] %v1947_v28   ;;  %v1007_v32 = vpop.f32.mrf.mxu1  ;;  %v919_v34 = vadd.f32 %v2361_v12, %v918_v31  ;;  %v1095_v35 = vadd.f32 %v1094_v29, %v1006_v30  ;;  %v1190_v54 = vpop.f32.mrf.mxu3 }
 0x18c   : > { %v1008_v36 = vadd.f32 %v1007_v32, %v919_v34  ;;  %v1184_v38 = vadd.f32 %v1183_v19, %v1095_v35 }
 0x18e   : > { %v1224_v44 = vmax.f32 %v1184_v38, 0.0 }
 0x191   : > { %v1096_v37 = vpop.f32.mrf.mxu2  ;;  %v921_v40 = vpop.f32.mrf.mxu0 }
 0x192   : > { %v1097_v39 = vadd.f32 %v1096_v37, %v1008_v36  ;;  %v1010_v41 = vpop.f32.mrf.mxu1  ;;  %v922_v47 = vadd.f32 %v2361_v12, %v921_v40  ;;  %v1193_v2 = vpop.f32.mrf.mxu3 }
 0x194   : > { %v1186_v42 = vadd.f32 %v1185_v33, %v1097_v39  ;;  %v1011_v49 = vadd.f32 %v1010_v41, %v922_v47 }
 0x196   : > { %v1225_v46 = vmax.f32 %v1186_v42, 0.0 }
 0x198   : > { %v1952_v45 = vpack.c.bf16 %v1225_v46, %v1224_v44 }
 0x199   : > { %v1099_v48 = vpop.f32.mrf.mxu2  ;;  %v923_v50 = vpop.f32.mrf.mxu0 }
 0x19a   : > { %1976 = vst [vmem:[%s2379_s9 + $0x68] sm:$0xff] %v1952_v45   ;;  %v1012_v51 = vpop.f32.mrf.mxu1  ;;  %v924_v52 = vadd.f32 %v2361_v12, %v923_v50  ;;  %v1100_v53 = vadd.f32 %v1099_v48, %v1011_v49  ;;  %v1195_v14 = vpop.f32.mrf.mxu3 }
 0x19c   : > { %v1013_v55 = vadd.f32 %v1012_v51, %v924_v52  ;;  %v1189_v57 = vadd.f32 %v1188_v43, %v1100_v53 }
 0x19e   : > { %v1226_v62 = vmax.f32 %v1189_v57, 0.0 }
 0x1a1   : > { %v1101_v56 = vpop.f32.mrf.mxu2  ;;  %v926_v59 = vpop.f32.mrf.mxu0 }
 0x1a2   : > { %v1102_v58 = vadd.f32 %v1101_v56, %v1013_v55  ;;  %v1015_v61 = vpop.f32.mrf.mxu1  ;;  %v927_v0 = vadd.f32 %v2361_v12, %v926_v59 }
 0x1a4   : > { %v1191_v60 = vadd.f32 %v1190_v54, %v1102_v58  ;;  %v1016_v4 = vadd.f32 %v1015_v61, %v927_v0 }
 0x1a6   : > { %v1227_v63 = vmax.f32 %v1191_v60, 0.0 }
 0x1a8   : > { %v1957_v1 = vpack.c.bf16 %v1227_v63, %v1226_v62 }
 0x1a9   : > { %v1104_v3 = vpop.f32.mrf.mxu2  ;;  %v928_v5 = vpop.f32.mrf.mxu0 }
 0x1aa   : > { %1977 = vst [vmem:[%s2379_s9 + $0x70] sm:$0xff] %v1957_v1   ;;  %v929_v6 = vadd.f32 %v2361_v12, %v928_v5  ;;  %v1105_v7 = vadd.f32 %v1104_v3, %v1016_v4  ;;  %v1017_v8 = vpop.f32.mrf.mxu1 }
 0x1ac   : > { %v1018_v9 = vadd.f32 %v1017_v8, %v929_v6  ;;  %v1194_v11 = vadd.f32 %v1193_v2, %v1105_v7 }
 0x1ae   : > { %v1228_v16 = vmax.f32 %v1194_v11, 0.0 }
 0x1b1   : > { %v1106_v10 = vpop.f32.mrf.mxu2 }
 0x1b2   : > { %v1107_v13 = vadd.f32 %v1106_v10, %v1018_v9 }
 0x1b4   : > { %v1196_v15 = vadd.f32 %v1195_v14, %v1107_v13 }
 0x1b6   : > { %v1229_v12 = vmax.f32 %v1196_v15, 0.0 }
 0x1b8   : > { %v1962_v17 = vpack.c.bf16 %v1229_v12, %v1228_v16 }
 0x1ba   : > { %1978 = vst [vmem:[%s2379_s9 + $0x78] sm:$0xff] %v1962_v17  }
 0x1bb   : > { %2064 = shalt.err (!%p2061_p5)
}
 0x1bc   : > { %s2117_s6 = smov 64   ;;  %s2118_s7 = smov 4  }
 0x1bd   : > { %1979 = dma.vmem_to_hbm [thread:$0]  (%p2179_p4), %s1309_s19, 2048, %s1311_s21, %s1295_s15, %s2117_s6, %s2117_s6, %s2118_s7  }
 0x1be PF: > { %p1985_p6 = scmp.ge.s32.totalorder %s2115_s17, 2  ;;  %s1325_s8 = sand.u32 1, %s2095_s12  }
 0x1bf   : > { %s1326_s9 = scalar_lea.sflag [#allocation3], %s1325_s8 }
 0x1c0   : > { %p1982_p7 = pnand %p1985_p6, %p2186_p8 }
 0x1c2   : > { %p1983_p9 = pneg %p1982_p7 }
 0x1c4   : > { %2090 = dma.done.wait (%p1983_p9), %s1326_s9, 2048  }
 0x1c5   : > { %2092 = vsyncadd (%p1983_p9), %s1326_s9, 4294965248  ;;  %s16_s17 = sadd.s32 1, %s2115_s17   ;;  %s2522_s12 = smov %s2099_s13 }
 0x1c6   : > { %p13_p10 = scmp.ge.s32.totalorder %s16_s17, 10   ;;  %s2523_s13 = smov %s2103_s14 }
 0x1c7   : > { %s2524_s14 = smov %s2192_s25  ;;  %s2525_s15 = smov %s2111_s16 }
 0x1c8   : > { %s2526_s16 = smov %s2528_s20  ;;  %15 = sbr.rel (!%p13_p10) target bundleno = 4 (0x4), region = 73 }
 0x1cd   :  { %1332 = vsyncpa [#allocation3], 1 }
 0x1ce   :  { %1334 = vsyncpa [#allocation3 + $0x1], 1 }

</bundles_post_ra>
